<compile_context>
chip_gen: v6e
topology: v6e:2x2x1
jax: 0.10.0
libtpu: 0.0.40
codegen_flags: <defaults>
</compile_context>

<pallas_src>
import functools
import math

import jax
import jax.numpy as jnp
from jax.experimental import pallas as pl
from jax.experimental.pallas import tpu as pltpu


def _ffn_kernel(eps, x_ref, w1_ref, b1_ref, w2_ref, b2_ref, g_ref, beta_ref,
                out_ref, xn_ref, acc_ref):
    """Grid = (row tiles, F tiles).  Per step:

    x_ref:    (tm, D)   input rows (same block across the F axis -> no re-DMA)
    w1_ref:   (D, tf)   w_1 column block (pre-transposed)
    b1_ref:   (1, tf)   b_1 block
    w2_ref:   (tf, D)   w_2 row block (pre-transposed)
    b2_ref:   (1, D)    b_2
    g_ref:    (1, D)    LayerNorm scale a_2
    beta_ref: (1, D)    LayerNorm shift b_2
    out_ref:  (tm, D)   output rows (same block across the F axis)
    xn_ref:   (tm, D)   scratch: LayerNorm output, weight dtype
    acc_ref:  (tm, D)   scratch: f32 accumulator for the w_2 contraction
    """
    j = pl.program_id(1)

    # ---- LayerNorm once per row tile (PyTorch: unbiased std, eps on std) ----
    @pl.when(j == 0)
    def _():
        xf = x_ref[...].astype(jnp.float32)
        d = xf.shape[-1]
        mean = jnp.mean(xf, axis=-1, keepdims=True)
        centered = xf - mean
        var = jnp.sum(centered * centered, axis=-1, keepdims=True) * (1.0 / (d - 1))
        # (tm, 1) reciprocal on the EUP; the rest is a cheap broadcast multiply.
        inv = pl.reciprocal(jnp.sqrt(var) + eps, approx=True)
        xn = g_ref[...] * (centered * inv) + beta_ref[...]
        xn_ref[...] = xn.astype(xn_ref.dtype)
        acc_ref[...] = jnp.zeros_like(acc_ref)

    # ---- w_1 block + ReLU (elementwise over F, so per-block is exact) ----
    h = jnp.dot(xn_ref[...], w1_ref[...], preferred_element_type=jnp.float32)
    h = jnp.maximum(h + b1_ref[...], 0.0)

    # ---- partial w_2 contraction over this F block ----
    acc_ref[...] += jnp.dot(h.astype(w2_ref.dtype), w2_ref[...],
                            preferred_element_type=jnp.float32)

    # ---- finalize: bias + residual ----
    @pl.when(j == pl.num_programs(1) - 1)
    def _():
        out_ref[...] = (acc_ref[...] + b2_ref[...]
                        + x_ref[...].astype(jnp.float32)).astype(out_ref.dtype)


def positionwise_feed_forward(x, params, *, eps=1e-6, block_rows=256,
                              block_ff=512):
    """x: (B, L, D); params = (w1, b1, w2, b2, a_2, b_2) with w1:(D,F), w2:(F,D)."""
    w1, b1, w2, b2, gamma, beta = params
    B, L, D = x.shape
    F = w1.shape[1]
    M = B * L
    assert D > 1, "unbiased variance (1/(d-1)) requires d_model > 1"

    x2 = x.reshape(M, D)

    # Row tile: full extent or a multiple of 8 sublanes; ragged last block is
    # handled by Pallas (row-local math, masked writes) -> no pad/slice copies.
    tm = min(block_rows, M)
    if tm != M:
        tm = max(8, (tm // 8) * 8)
    grid_m = pl.cdiv(M, tm)

    # F tile must divide F exactly (the contraction is NOT robust to garbage
    # columns); fall back to the full hidden dim otherwise.
    tf = block_ff if (block_ff < F and F % block_ff == 0) else F
    grid_f = F // tf

    wb = jnp.dtype(w1.dtype).itemsize
    xb = jnp.dtype(x.dtype).itemsize

    # VMEM budget: double-buffered weight blocks + x/out tiles + scratch + h.
    est = (2 * (D * tf + tf * D) * wb          # w1/w2 blocks, 2 buffers
           + 4 * tm * D * xb                   # x + out tiles, 2 buffers each
           + tm * D * (wb + 4)                 # xn + acc scratch
           + 2 * tm * tf * 4                   # h intermediate headroom
           + 4 * (tf + 3 * D) * 4)             # biases / LN params
    vmem_limit = int(min(max(est * 1.25, 32 * 1024 * 1024), 100 * 1024 * 1024))

    cost = pl.CostEstimate(
        flops=2 * M * (D * F + F * D),
        transcendentals=2 * M,
        bytes_accessed=int(2 * M * D * xb + grid_m * 2 * D * F * wb
                           + (F + 3 * D) * 4),
    )

    out2 = pl.pallas_call(
        functools.partial(_ffn_kernel, eps),
        out_shape=jax.ShapeDtypeStruct((M, D), x.dtype),
        grid=(grid_m, grid_f),
        in_specs=[
            pl.BlockSpec((tm, D), lambda i, j: (i, 0)),   # x rows
            pl.BlockSpec((D, tf), lambda i, j: (0, j)),   # w_1 column block
            pl.BlockSpec((1, tf), lambda i, j: (0, j)),   # b_1 block
            pl.BlockSpec((tf, D), lambda i, j: (j, 0)),   # w_2 row block
            pl.BlockSpec((1, D), lambda i, j: (0, 0)),    # b_2
            pl.BlockSpec((1, D), lambda i, j: (0, 0)),    # layer_norm a_2
            pl.BlockSpec((1, D), lambda i, j: (0, 0)),    # layer_norm b_2
        ],
        out_specs=pl.BlockSpec((tm, D), lambda i, j: (i, 0)),
        scratch_shapes=[
            pltpu.VMEM((tm, D), w1.dtype),     # LayerNorm output cache
            pltpu.VMEM((tm, D), jnp.float32),  # w_2 accumulator
        ],
        compiler_params=pltpu.CompilerParams(
            dimension_semantics=("parallel", "arbitrary"),
            vmem_limit_bytes=vmem_limit),
        cost_estimate=cost,
    )(x2, w1, b1, w2, b2, gamma, beta)

    return out2.reshape(B, L, D)


def _reference(x, params, eps=1e-6):
    """Plain-JAX reference matching the PyTorch forward (eval mode), with the
    same bf16 cast points as the kernel so tolerances stay tight."""
    w1, b1, w2, b2, gamma, beta = params
    d = x.shape[-1]
    mean = jnp.mean(x, axis=-1, keepdims=True)
    centered = x - mean
    var = jnp.sum(centered * centered, axis=-1, keepdims=True) / (d - 1)
    std = jnp.sqrt(var)                         # PyTorch x.std(-1): unbiased
    xn = gamma[0] * centered / (std + eps) + beta[0]
    h = jnp.dot(xn.astype(w1.dtype), w1,
                preferred_element_type=jnp.float32) + b1[0]
    h = jax.nn.relu(h)
    y = jnp.dot(h.astype(w2.dtype), w2,
                preferred_element_type=jnp.float32) + b2[0]
    return y + x


def _init_params(rng, d_model, d_ff, w_dtype=jnp.bfloat16):
    """Deterministic synthetic weights matching nn.Linear / LayerNorm init.
    Weights are stored pre-transposed (in, out) and cast to `w_dtype` (bf16 ->
    native MXU format); biases / LayerNorm params stay f32."""
    k = jax.random.split(rng, 4)

    def lin(kw, kb, in_dim, out_dim):
        bound = 1.0 / math.sqrt(in_dim)
        w = jax.random.uniform(kw, (in_dim, out_dim), jnp.float32, -bound, bound)
        b = jax.random.uniform(kb, (1, out_dim), jnp.float32, -bound, bound)
        return w.astype(w_dtype), b

    w1, b1 = lin(k[0], k[1], d_model, d_ff)
    w2, b2 = lin(k[2], k[3], d_ff, d_model)
    gamma = jnp.ones((1, d_model), jnp.float32)   # a_2
    beta = jnp.zeros((1, d_model), jnp.float32)   # b_2
    return (w1, b1, w2, b2, gamma, beta)


if __name__ == "__main__":
    batch = 2
    seq_len = 16
    d_model = 128   # lane-dense last dim (multiple of 128)
    d_ff = 256

    root = jax.random.PRNGKey(0)
    k_params, k_x = jax.random.split(root, 2)

    params = _init_params(k_params, d_model, d_ff)
    x = jax.random.normal(k_x, (batch, seq_len, d_model), jnp.float32)

    out = positionwise_feed_forward(x, params)
    out = jax.block_until_ready(out)

    ref = _reference(x, params)
    assert out.shape == (batch, seq_len, d_model), "shape mismatch"
    assert jnp.allclose(out.astype(jnp.float32), ref.astype(jnp.float32),
                        atol=2e-2, rtol=2e-2), "output mismatch"

    print("KERNEL_OK")
</pallas_src>

<mosaic_0001>
module attributes {stable_mosaic.version = 11 : i64} {
  func.func @_ffn_kernel(%arg0: i32, %arg1: i32, %arg2: memref<32x128xf32, #tpu.memory_space<vmem>>, %arg3: memref<128x256xbf16, #tpu.memory_space<vmem>>, %arg4: memref<1x256xf32, #tpu.memory_space<vmem>>, %arg5: memref<256x128xbf16, #tpu.memory_space<vmem>>, %arg6: memref<1x128xf32, #tpu.memory_space<vmem>>, %arg7: memref<1x128xf32, #tpu.memory_space<vmem>>, %arg8: memref<1x128xf32, #tpu.memory_space<vmem>>, %arg9: memref<32x128xf32, #tpu.memory_space<vmem>>, %arg10: memref<32x128xbf16, #tpu.memory_space<vmem>>, %arg11: memref<32x128xf32, #tpu.memory_space<vmem>>) attributes {dimension_semantics = [#tpu.dimension_semantics<parallel>, #tpu.dimension_semantics<arbitrary>], iteration_bounds = array<i64: 1, 1>, scalar_prefetch = 0 : i64, scratch_operands = 2 : i64, tpu.core_type = #tpu.core_type<tc>, window_params = [{transform_indices = @transform_0, window_bounds = array<i64: 32, 128>}, {transform_indices = @transform_1, window_bounds = array<i64: 128, 256>}, {transform_indices = @transform_2, window_bounds = array<i64: 1, 256>}, {transform_indices = @transform_3, window_bounds = array<i64: 256, 128>}, {pipeline_mode = #tpu.pipeline_mode<synchronous>, transform_indices = @transform_4, window_bounds = array<i64: 1, 128>}, {pipeline_mode = #tpu.pipeline_mode<synchronous>, transform_indices = @transform_5, window_bounds = array<i64: 1, 128>}, {pipeline_mode = #tpu.pipeline_mode<synchronous>, transform_indices = @transform_6, window_bounds = array<i64: 1, 128>}, {transform_indices = @transform_7, window_bounds = array<i64: 32, 128>}]} {
    %c0_i32 = arith.constant 0 : i32
    %0 = arith.cmpi eq, %arg1, %c0_i32 : i32
    %1 = arith.extui %0 : i1 to i32
    %c0_i32_0 = arith.constant 0 : i32
    %2 = arith.cmpi ne, %1, %c0_i32_0 : i32
    scf.if %2 {
      %c0_16 = arith.constant 0 : index
      %c0_17 = arith.constant 0 : index
      %20 = vector.load %arg2[%c0_16, %c0_17] : memref<32x128xf32, #tpu.memory_space<vmem>>, vector<32x128xf32>
      %cst_18 = arith.constant dense<0.000000e+00> : vector<32xf32>
      %21 = vector.multi_reduction <add>, %20, %cst_18 [1] : vector<32x128xf32> to vector<32xf32>
      %22 = vector.shape_cast %21 : vector<32xf32> to vector<32x1xf32>
      %cst_19 = arith.constant 1.280000e+02 : f32
      %23 = vector.broadcast %cst_19 : f32 to vector<32x1xf32>
      %24 = arith.divf %22, %23 : vector<32x1xf32>
      %25 = vector.broadcast %24 : vector<32x1xf32> to vector<32x128xf32>
      %26 = arith.subf %20, %25 : vector<32x128xf32>
      %27 = arith.mulf %26, %26 : vector<32x128xf32>
      %cst_20 = arith.constant dense<0.000000e+00> : vector<32xf32>
      %28 = vector.multi_reduction <add>, %27, %cst_20 [1] : vector<32x128xf32> to vector<32xf32>
      %29 = vector.shape_cast %28 : vector<32xf32> to vector<32x1xf32>
      %cst_21 = arith.constant 0.00787401571 : f32
      %30 = vector.broadcast %cst_21 : f32 to vector<32x1xf32>
      %31 = arith.mulf %29, %30 : vector<32x1xf32>
      %32 = math.sqrt %31 : vector<32x1xf32>
      %cst_22 = arith.constant 9.99999997E-7 : f32
      %33 = vector.broadcast %cst_22 : f32 to vector<32x1xf32>
      %34 = arith.addf %32, %33 : vector<32x1xf32>
      %35 = tpu.reciprocal %34 {approx = true} : vector<32x1xf32> -> vector<32x1xf32>
      %c0_23 = arith.constant 0 : index
      %c0_24 = arith.constant 0 : index
      %36 = vector.load %arg7[%c0_23, %c0_24] : memref<1x128xf32, #tpu.memory_space<vmem>>, vector<1x128xf32>
      %37 = vector.broadcast %35 : vector<32x1xf32> to vector<32x128xf32>
      %38 = arith.mulf %26, %37 : vector<32x128xf32>
      %39 = vector.broadcast %36 : vector<1x128xf32> to vector<32x128xf32>
      %40 = arith.mulf %39, %38 : vector<32x128xf32>
      %c0_25 = arith.constant 0 : index
      %c0_26 = arith.constant 0 : index
      %41 = vector.load %arg8[%c0_25, %c0_26] : memref<1x128xf32, #tpu.memory_space<vmem>>, vector<1x128xf32>
      %42 = vector.broadcast %41 : vector<1x128xf32> to vector<32x128xf32>
      %43 = arith.addf %40, %42 : vector<32x128xf32>
      %44 = arith.truncf %43 : vector<32x128xf32> to vector<32x128xbf16>
      %c0_27 = arith.constant 0 : index
      %c0_28 = arith.constant 0 : index
      %45 = vector.load %arg10[%c0_27, %c0_28] : memref<32x128xbf16, #tpu.memory_space<vmem>>, vector<32x128xbf16>
      tpu.vector_store %arg10[%c0_27, %c0_28], %44 {strides = array<i32>} : memref<32x128xbf16, #tpu.memory_space<vmem>>, vector<32x128xbf16>,
      %cst_29 = arith.constant 0.000000e+00 : f32
      %46 = vector.broadcast %cst_29 : f32 to vector<32x128xf32>
      %c0_30 = arith.constant 0 : index
      %c0_31 = arith.constant 0 : index
      %47 = vector.load %arg11[%c0_30, %c0_31] : memref<32x128xf32, #tpu.memory_space<vmem>>, vector<32x128xf32>
      tpu.vector_store %arg11[%c0_30, %c0_31], %46 {strides = array<i32>} : memref<32x128xf32, #tpu.memory_space<vmem>>, vector<32x128xf32>,
    } else {
    }
    %c0 = arith.constant 0 : index
    %c0_1 = arith.constant 0 : index
    %3 = vector.load %arg10[%c0, %c0_1] : memref<32x128xbf16, #tpu.memory_space<vmem>>, vector<32x128xbf16>
    %c0_2 = arith.constant 0 : index
    %c0_3 = arith.constant 0 : index
    %4 = vector.load %arg3[%c0_2, %c0_3] : memref<128x256xbf16, #tpu.memory_space<vmem>>, vector<128x256xbf16>
    %cst = arith.constant dense<0.000000e+00> : vector<32x256xf32>
    %5 = tpu.matmul %3, %4, %cst {dimension_numbers = #tpu.dot_dimension_numbers<[1], [0], [0], [1], [0, 0, 1, 1], [], []>} : vector<32x128xbf16>, vector<128x256xbf16>, vector<32x256xf32> -> vector<32x256xf32>
    %c0_4 = arith.constant 0 : index
    %c0_5 = arith.constant 0 : index
    %6 = vector.load %arg4[%c0_4, %c0_5] : memref<1x256xf32, #tpu.memory_space<vmem>>, vector<1x256xf32>
    %7 = vector.broadcast %6 : vector<1x256xf32> to vector<32x256xf32>
    %8 = arith.addf %5, %7 : vector<32x256xf32>
    %cst_6 = arith.constant 0.000000e+00 : f32
    %9 = vector.broadcast %cst_6 : f32 to vector<32x256xf32>
    %10 = arith.maximumf %8, %9 : vector<32x256xf32>
    %c0_7 = arith.constant 0 : index
    %c0_8 = arith.constant 0 : index
    %11 = vector.load %arg11[%c0_7, %c0_8] : memref<32x128xf32, #tpu.memory_space<vmem>>, vector<32x128xf32>
    %12 = arith.truncf %10 : vector<32x256xf32> to vector<32x256xbf16>
    %c0_9 = arith.constant 0 : index
    %c0_10 = arith.constant 0 : index
    %13 = vector.load %arg5[%c0_9, %c0_10] : memref<256x128xbf16, #tpu.memory_space<vmem>>, vector<256x128xbf16>
    %cst_11 = arith.constant dense<0.000000e+00> : vector<32x128xf32>
    %14 = tpu.matmul %12, %13, %cst_11 {dimension_numbers = #tpu.dot_dimension_numbers<[1], [0], [0], [1], [0, 0, 1, 1], [], []>} : vector<32x256xbf16>, vector<256x128xbf16>, vector<32x128xf32> -> vector<32x128xf32>
    %15 = arith.addf %11, %14 : vector<32x128xf32>
    %c0_12 = arith.constant 0 : index
    %c0_13 = arith.constant 0 : index
    %16 = vector.load %arg11[%c0_12, %c0_13] : memref<32x128xf32, #tpu.memory_space<vmem>>, vector<32x128xf32>
    tpu.vector_store %arg11[%c0_12, %c0_13], %15 {strides = array<i32>} : memref<32x128xf32, #tpu.memory_space<vmem>>, vector<32x128xf32>,
    %c0_i32_14 = arith.constant 0 : i32
    %17 = arith.cmpi eq, %arg1, %c0_i32_14 : i32
    %18 = arith.extui %17 : i1 to i32
    %c0_i32_15 = arith.constant 0 : i32
    %19 = arith.cmpi ne, %18, %c0_i32_15 : i32
    scf.if %19 {
      %c0_16 = arith.constant 0 : index
      %c0_17 = arith.constant 0 : index
      %20 = vector.load %arg11[%c0_16, %c0_17] : memref<32x128xf32, #tpu.memory_space<vmem>>, vector<32x128xf32>
      %c0_18 = arith.constant 0 : index
      %c0_19 = arith.constant 0 : index
      %21 = vector.load %arg6[%c0_18, %c0_19] : memref<1x128xf32, #tpu.memory_space<vmem>>, vector<1x128xf32>
      %22 = vector.broadcast %21 : vector<1x128xf32> to vector<32x128xf32>
      %23 = arith.addf %20, %22 : vector<32x128xf32>
      %c0_20 = arith.constant 0 : index
      %c0_21 = arith.constant 0 : index
      %24 = vector.load %arg2[%c0_20, %c0_21] : memref<32x128xf32, #tpu.memory_space<vmem>>, vector<32x128xf32>
      %25 = arith.addf %23, %24 : vector<32x128xf32>
      %c0_22 = arith.constant 0 : index
      %c0_23 = arith.constant 0 : index
      %26 = vector.load %arg9[%c0_22, %c0_23] : memref<32x128xf32, #tpu.memory_space<vmem>>, vector<32x128xf32>
      tpu.vector_store %arg9[%c0_22, %c0_23], %25 {strides = array<i32>} : memref<32x128xf32, #tpu.memory_space<vmem>>, vector<32x128xf32>,
    } else {
    }
    return
  }
  func.func @transform_0(%arg0: i32, %arg1: i32) -> (i32, i32) {
    %c0_i32 = arith.constant 0 : i32
    %c0_i32_0 = arith.constant 0 : i32
    return %arg0, %c0_i32 : i32, i32
  }
  func.func @transform_1(%arg0: i32, %arg1: i32) -> (i32, i32) {
    %c0_i32 = arith.constant 0 : i32
    %c0_i32_0 = arith.constant 0 : i32
    return %c0_i32, %arg1 : i32, i32
  }
  func.func @transform_2(%arg0: i32, %arg1: i32) -> (i32, i32) {
    %c0_i32 = arith.constant 0 : i32
    %c0_i32_0 = arith.constant 0 : i32
    return %c0_i32, %arg1 : i32, i32
  }
  func.func @transform_3(%arg0: i32, %arg1: i32) -> (i32, i32) {
    %c0_i32 = arith.constant 0 : i32
    %c0_i32_0 = arith.constant 0 : i32
    return %arg1, %c0_i32 : i32, i32
  }
  func.func @transform_4(%arg0: i32, %arg1: i32) -> (i32, i32) {
    %c0_i32 = arith.constant 0 : i32
    %c0_i32_0 = arith.constant 0 : i32
    %c0_i32_1 = arith.constant 0 : i32
    return %c0_i32, %c0_i32_0 : i32, i32
  }
  func.func @transform_5(%arg0: i32, %arg1: i32) -> (i32, i32) {
    %c0_i32 = arith.constant 0 : i32
    %c0_i32_0 = arith.constant 0 : i32
    %c0_i32_1 = arith.constant 0 : i32
    return %c0_i32, %c0_i32_0 : i32, i32
  }
  func.func @transform_6(%arg0: i32, %arg1: i32) -> (i32, i32) {
    %c0_i32 = arith.constant 0 : i32
    %c0_i32_0 = arith.constant 0 : i32
    %c0_i32_1 = arith.constant 0 : i32
    return %c0_i32, %c0_i32_0 : i32, i32
  }
  func.func @transform_7(%arg0: i32, %arg1: i32) -> (i32, i32) {
    %c0_i32 = arith.constant 0 : i32
    %c0_i32_0 = arith.constant 0 : i32
    return %arg0, %c0_i32 : i32, i32
  }
}

</mosaic_0001>

<bundles_post_ra>
// kernel: tpu_custom_call.1
= control target key start
LH: loop header
LB: loop body
LE: loop exit
PB: predicated region body
PF: predicated region fallthrough
CT: control target
= control target key end

     0   :  { %12 = vsyncpa [#allocation5], 0  ;;  %s983_s0 = inlined_call_operand.hbm [shape: f32[32,128], index: 0, kind: input, shape index: {}]   ;;  %s984_s1 = inlined_call_operand.hbm [shape: bf16[128,256], index: 1, kind: input, shape index: {}]   ;;  %s985_s2 = inlined_call_operand.vmem [shape: f32[1,256], index: 2, kind: input, shape index: {}]   ;;  %s986_s3 = inlined_call_operand.hbm [shape: bf16[256,128], index: 3, kind: input, shape index: {}]   ;;  %s987_s4 = inlined_call_operand.vmem [shape: f32[1,128], index: 4, kind: input, shape index: {}]   ;;  %s988_s5 = inlined_call_operand.vmem [shape: f32[1,128], index: 5, kind: input, shape index: {}]   ;;  %s989_s6 = inlined_call_operand.vmem [shape: f32[1,128], index: 6, kind: input, shape index: {}]   ;;  %s990_s7 = inlined_call_operand.hbm [shape: f32[32,128], index: 7, kind: output, shape index: {}]  }
   0x1   :  { %13 = vsyncpa [#allocation8], 0 }
   0x2   :  { %14 = vsyncpa [#allocation6], 0  ;;  %s859_s24 = smov [#allocation7]   ;;  %s860_s26 = smov [#allocation4]  }
   0x3   :  { %s32_s25 = sshll.u32 %s859_s24, 4  ;;  %s20_s27 = sshll.u32 %s860_s26, 4  ;;  %s33_s25 = int_to_ptr.vmem [resolvable:$true] %s32_s25  ;;  %s21_s27 = int_to_ptr.vmem [resolvable:$true] %s20_s27 }
   0x4   :  { %s781_s28 = scalar_lea.vmem %s33_s25, 2048  ;;  %p786_p1 = scmp.lt.s32.totalorder %s33_s25, %s33_s25 }
   0x5   :  { %p782_p0 = scmp.ne.s32.totalorder %s33_s25, %s781_s28  ;;  %p787_p2 = scmp.lt.s32.totalorder %s781_s28, %s781_s28 }
   0x7   :  { %p788_p3 = por %p787_p2, %p786_p1 }
   0x9   :  { %p789_p4 = pnand %p788_p3, %p782_p0 }
   0xb   :  { %792 = shalt.err (!%p789_p4)
}
   0xc   :  { %s861_s29 = smov 128   ;;  %s862_s30 = smov 8  }
   0xd   :  { %38 = dma.hbm_to_vmem [thread:$0]  %s984_s1, 2048, %s33_s25, [#allocation8], %s861_s29, %s861_s29, %s862_s30  }
   0xe   :  { %s801_s10 = scalar_lea.vmem %s21_s27, 512  ;;  %p806_p6 = scmp.lt.s32.totalorder %s21_s27, %s21_s27 }
   0xf   :  { %p802_p5 = scmp.ne.s32.totalorder %s21_s27, %s801_s10  ;;  %p807_p7 = scmp.lt.s32.totalorder %s801_s10, %s801_s10 }
  0x11   :  { %p808_p8 = por %p807_p7, %p806_p6 }
  0x13   :  { %p809_p9 = pnand %p808_p8, %p802_p5 }
  0x15   :  { %812 = shalt.err (!%p809_p9)
}
  0x16   :  { %26 = dma.hbm_to_vmem [thread:$0]  %s983_s0, 512, %s21_s27, [#allocation5], %s861_s29, %s861_s29, %s862_s30  }
  0x17   :  { %s863_s13 = smov [#allocation9]  }
  0x18   :  { %s46_s14 = sshll.u32 %s863_s13, 4  ;;  %s47_s14 = int_to_ptr.vmem [resolvable:$true] %s46_s14 }
  0x19   :  { %s821_s15 = scalar_lea.vmem %s47_s14, 2048  ;;  %p826_p11 = scmp.lt.s32.totalorder %s47_s14, %s47_s14 }
  0x1a   :  { %p822_p10 = scmp.ne.s32.totalorder %s47_s14, %s821_s15  ;;  %p827_p12 = scmp.lt.s32.totalorder %s821_s15, %s821_s15 }
  0x1c   :  { %p828_p13 = por %p827_p12, %p826_p11 }
  0x1e   :  { %p829_p0 = pnand %p828_p13, %p822_p10 }
  0x20   :  { %832 = shalt.err (!%p829_p0)
}
  0x21   :  { %s864_s1 = smov 64   ;;  %s865_s16 = smov 4  }
  0x22   :  { %52 = dma.hbm_to_vmem [thread:$0]  %s986_s3, 2048, %s47_s14, [#allocation8], %s864_s1, %s864_s1, %s865_s16  }
  0x23   :  { %853 = dma.done.wait [#allocation5], 512  }
  0x24   :  { %854 = vsyncadd [#allocation5], 4294966784 }
  0x25   :  { %855 = dma.done.wait [#allocation8], 4096  }
  0x26   :  { %856 = vsyncadd [#allocation8], 4294963200  ;;  %v923_v0 = vld [vmem:[#allocation4] sm:$0xff]  ;;  %v925_v1 = vld [vmem:[#allocation4 + $0x10] sm:$0xff]  ;;  %v866_v35 = vmov 0  }
  0x27   :  { %v927_v2 = vld [vmem:[#allocation4 + $0x8] sm:$0xff]  ;;  %77 = vadd.xlane.f32.xlu0 %v923_v0  ;;  %81 = vadd.xlane.f32.xlu1 %v925_v1  ;;  %v931_v3 = vld [vmem:[#allocation4 + $0x18] sm:$0xff]  ;;  %v743_v39 = vld [vmem:[#allocation9 + $0x70] sm:$0xff]  }
  0x28   :  { %v715_v20 = vld [vmem:[#allocation7 + $0x74] ss:$8 sps:$4 sm:$0xff]   ;;  %v717_v21 = vld [vmem:[#allocation7 + $0x70] ss:$8 sps:$4 sm:$0xff]   ;;  %v718_v22 = vld [vmem:[#allocation7 + $0x64] ss:$8 sps:$4 sm:$0xff]   ;;  %352 = vmatprep.mubr.bf16.mxu0 %v866_v35 }
  0x29   :  { %320 = vmatprep.subr.bf16.mxu0 %v715_v20  ;;  %v720_v23 = vld [vmem:[#allocation7 + $0x60] ss:$8 sps:$4 sm:$0xff]   ;;  %v721_v24 = vld [vmem:[#allocation7 + $0x54] ss:$8 sps:$4 sm:$0xff]   ;;  %v723_v25 = vld [vmem:[#allocation7 + $0x50] ss:$8 sps:$4 sm:$0xff]  }
  0x2a   :  { %321 = vmatpush1.bf16.msra.mxu0 %v717_v21  ;;  %v724_v26 = vld [vmem:[#allocation7 + $0x44] ss:$8 sps:$4 sm:$0xff]   ;;  %v726_v27 = vld [vmem:[#allocation7 + $0x40] ss:$8 sps:$4 sm:$0xff]   ;;  %v727_v28 = vld [vmem:[#allocation7 + $0x34] ss:$8 sps:$4 sm:$0xff]  }
  0x2b   :  { %79 = vadd.xlane.f32.xlu0 %v927_v2  ;;  %83 = vadd.xlane.f32.xlu1 %v931_v3  ;;  %v729_v29 = vld [vmem:[#allocation7 + $0x30] ss:$8 sps:$4 sm:$0xff]   ;;  %v730_v30 = vld [vmem:[#allocation7 + $0x24] ss:$8 sps:$4 sm:$0xff]   ;;  %v732_v31 = vld [vmem:[#allocation7 + $0x20] ss:$8 sps:$4 sm:$0xff]  }
  0x2c   :  { %322 = vmatprep.subr.bf16.mxu0 %v718_v22  ;;  %v733_v32 = vld [vmem:[#allocation7 + $0x14] ss:$8 sps:$4 sm:$0xff]   ;;  %v735_v33 = vld [vmem:[#allocation7 + $0x10] ss:$8 sps:$4 sm:$0xff]   ;;  %v736_v34 = vld [vmem:[#allocation7 + $0x4] ss:$8 sps:$4 sm:$0xff]  }
  0x2d   :  { %v738_v36 = vld [vmem:[#allocation7] ss:$8 sps:$4 sm:$0xff]   ;;  %v741_v37 = vld [vmem:[#allocation9 + $0x78] sm:$0xff]   ;;  %v744_v40 = vld [vmem:[#allocation9 + $0x30] sm:$0xff]  }
  0x2e   :  { %323 = vmatpush1.bf16.msra.mxu0 %v720_v23  ;;  %v742_v38 = vld [vmem:[#allocation9 + $0x38] sm:$0xff]   ;;  %678 = vmatprep.subr.bf16.mxu1 %v741_v37  ;;  %v745_v41 = vld [vmem:[#allocation9 + $0x68] sm:$0xff]   ;;  %v747_v43 = vld [vmem:[#allocation9 + $0x60] sm:$0xff]  }
  0x2f   :  { %324 = vmatprep.subr.bf16.mxu0 %v721_v24  ;;  %679 = vmatpush3.bf16.msra.mxu1 %v742_v38  ;;  %v746_v42 = vld [vmem:[#allocation9 + $0x28] sm:$0xff]   ;;  %v748_v44 = vld [vmem:[#allocation9 + $0x20] sm:$0xff]   ;;  %v749_v45 = vld [vmem:[#allocation9 + $0x58] sm:$0xff]  }
  0x30   :  { %680 = vmatprep.subr.bf16.mxu1 %v743_v39  ;;  %v750_v46 = vld [vmem:[#allocation9 + $0x18] sm:$0xff]  }
  0x32   :  { %325 = vmatpush1.bf16.msra.mxu0 %v723_v25  ;;  %v622_v25 = vld [vmem:[%s988_s5] ss:$0 sm:$0xff] }
  0x33   :  { %326 = vmatprep.subr.bf16.mxu0 %v724_v26  ;;  %681 = vmatpush3.bf16.msra.mxu1 %v744_v40 }
  0x34   :  { %682 = vmatprep.subr.bf16.mxu1 %v745_v41 }
  0x36   :  { %327 = vmatpush1.bf16.msra.mxu0 %v726_v27 }
  0x37   :  { %328 = vmatprep.subr.bf16.mxu0 %v727_v28  ;;  %683 = vmatpush3.bf16.msra.mxu1 %v746_v42 }
  0x38   :  { %684 = vmatprep.subr.bf16.mxu1 %v747_v43 }
  0x3a   :  { %329 = vmatpush1.bf16.msra.mxu0 %v729_v29 }
  0x3b   :  { %330 = vmatprep.subr.bf16.mxu0 %v730_v30  ;;  %685 = vmatpush3.bf16.msra.mxu1 %v748_v44  ;;  %v623_v30 = vld [vmem:[%s989_s6] ss:$0 sm:$0xff] }
  0x3c   :  { %686 = vmatprep.subr.bf16.mxu1 %v749_v45  ;;  %v752_v44 = vld [vmem:[#allocation9 + $0x10] sm:$0xff]   ;;  %v753_v45 = vld [vmem:[#allocation9 + $0x48] sm:$0xff]  }
  0x3e   :  { %331 = vmatpush1.bf16.msra.mxu0 %v732_v31 }
  0x3f   :  { %332 = vmatprep.subr.bf16.mxu0 %v733_v32  ;;  %687 = vmatpush3.bf16.msra.mxu1 %v750_v46  ;;  %v754_v46 = vld [vmem:[#allocation9 + $0x8] sm:$0xff]  }
  0x42   :  { %333 = vmatpush1.bf16.msra.mxu0 %v735_v33 }
  0x43   :  { %334 = vmatprep.subr.bf16.mxu0 %v736_v34 }
  0x46   :  { %335 = vmatpush1.bf16.msra.mxu0 %v738_v36 }
  0xb0   :  { %v78_v4 = vpop.xlane.xlu0 %77  ;;  %v82_v5 = vpop.xlane.xlu1 %81 }
  0xb1   :  { %v86_v6 = vmul.f32 0.0078125, %v78_v4  ;;  %v88_v7 = vmul.f32 0.0078125, %v82_v5 }
  0xb3   :  { %v936_v8 = vsub.f32 %v923_v0, %v86_v6  ;;  %v939_v9 = vsub.f32 %v925_v1, %v88_v7 }
  0xb4   :  { %v80_v10 = vpop.xlane.xlu0 %79  ;;  %v84_v11 = vpop.xlane.xlu1 %83 }
  0xb5   :  { %v87_v12 = vmul.f32 0.0078125, %v80_v10  ;;  %v94_v13 = vmul.f32 %v936_v8, %v936_v8  ;;  %v89_v14 = vmul.f32 0.0078125, %v84_v11  ;;  %v96_v17 = vmul.f32 %v939_v9, %v939_v9 }
  0xb7   :  { %v944_v15 = vsub.f32 %v927_v2, %v87_v12  ;;  %98 = vadd.xlane.f32.xlu0 %v94_v13  ;;  %v947_v16 = vsub.f32 %v931_v3, %v89_v14 }
  0xb9   :  { %v95_v18 = vmul.f32 %v944_v15, %v944_v15  ;;  %v97_v19 = vmul.f32 %v947_v16, %v947_v16 }
  0xbb   :  { %102 = vadd.xlane.f32.xlu0 %v96_v17  ;;  %100 = vadd.xlane.f32.xlu1 %v95_v18 }
  0xbf   :  { %104 = vadd.xlane.f32.xlu1 %v97_v19 }
 0x140   :  { %v99_v47 = vpop.xlane.xlu0 %98 }
 0x141   :  { %v106_v48 = vmul.f32 0.007874016, %v99_v47  ;;  %v756_v47 = vld [vmem:[#allocation9] sm:$0xff]  }
 0x143   :  { %757 = vrsqrt.f32 %v106_v48  ;;  %vm112_vm0 = vcmp.eq.f32.partialorder %v106_v48, inf  ;;  %v115_v57 = vand.u32 2147483648, %v106_v48  ;;  %vm114_vm1 = vcmp.eq.f32.partialorder %v106_v48, 0.0 }
 0x144   :  { %v101_v49 = vpop.xlane.xlu1 %100  ;;  %v103_v50 = vpop.xlane.xlu0 %102 }
 0x145   :  { %v107_v51 = vmul.f32 0.007874016, %v101_v49  ;;  %v108_v52 = vmul.f32 0.007874016, %v103_v50 }
 0x147   :  { %759 = vrsqrt.f32 %v107_v51  ;;  %vm119_vm2 = vcmp.eq.f32.partialorder %v107_v51, inf  ;;  %vm121_vm3 = vcmp.eq.f32.partialorder %v107_v51, 0.0  ;;  %v122_v4 = vand.u32 2147483648, %v107_v51 }
 0x148   :  { %761 = vrsqrt.f32 %v108_v52  ;;  %v105_v53 = vpop.xlane.xlu1 %104  ;;  %vm126_vm4 = vcmp.eq.f32.partialorder %v108_v52, inf  ;;  %v129_v7 = vand.u32 2147483648, %v108_v52  ;;  %vm128_vm5 = vcmp.eq.f32.partialorder %v108_v52, 0.0 }
 0x149   :  { %v109_v54 = vmul.f32 0.007874016, %v105_v53 }
 0x14b   :  { %763 = vrsqrt.f32 %v109_v54  ;;  %vm133_vm6 = vcmp.eq.f32.partialorder %v109_v54, inf  ;;  %v136_v19 = vand.u32 2147483648, %v109_v54  ;;  %vm135_vm7 = vcmp.eq.f32.partialorder %v109_v54, 0.0 }
 0x150   :  { %v758_v55 = vpop.eup %757 }
 0x151   :  { %v111_v56 = vmul.f32 %v758_v55, %v106_v48 }
 0x153   :  { %v113_v58 = vsel %vm112_vm0, %v106_v48, %v111_v56  ;;  %v218_v48 = vlaneseq }
 0x154   :  { %v760_v59 = vpop.eup %759  ;;  %v116_v60 = vsel %vm114_vm1, %v115_v57, %v113_v58 }
 0x155   :  { %v762_v61 = vpop.eup %761  ;;  %v138_v62 = vadd.f32 1e-06, %v116_v60  ;;  %v118_v63 = vmul.f32 %v760_v59, %v107_v51  ;;  %v219_v49 = vshrl.u32 %v218_v48, 7 }
 0x156   :  { %v125_v5 = vmul.f32 %v762_v61, %v108_v52 }
 0x157   :  { %765 = vrcp.f32 %v138_v62  ;;  %v120_v6 = vsel %vm119_vm2, %v107_v51, %v118_v63  ;;  %v224_v50 = vsub.s32 1, %v219_v49  ;;  %v220_v51 = vsub.s32 0, %v219_v49 }
 0x158   :  { %v764_v10 = vpop.eup %763  ;;  %v123_v11 = vsel %vm121_vm3, %v122_v4, %v120_v6  ;;  %v127_v12 = vsel %vm126_vm4, %v108_v52, %v125_v5 }
 0x159   :  { %v139_v13 = vadd.f32 1e-06, %v123_v11  ;;  %v130_v14 = vsel %vm128_vm5, %v129_v7, %v127_v12  ;;  %v132_v17 = vmul.f32 %v764_v10, %v109_v54 }
 0x15a   :  { %v140_v18 = vadd.f32 1e-06, %v130_v14 }
 0x15b   :  { %767 = vrcp.f32 %v139_v13  ;;  %v134_v20 = vsel %vm133_vm6, %v109_v54, %v132_v17 }
 0x15c   :  { %769 = vrcp.f32 %v140_v18  ;;  %v137_v21 = vsel %vm135_vm7, %v136_v19, %v134_v20 }
 0x15d   :  { %v141_v22 = vadd.f32 1e-06, %v137_v21 }
 0x15f   :  { %771 = vrcp.f32 %v141_v22 }
 0x164   :  { %v766_v23 = vpop.eup %765 }
 0x165   :  { %v147_v24 = vmul.f32 %v766_v23, %v936_v8 }
 0x167   :  { %v157_v28 = vmul.f32 %v622_v25, %v147_v24 }
 0x168   :  { %v768_v26 = vpop.eup %767 }
 0x169   :  { %v770_v27 = vpop.eup %769  ;;  %v148_v29 = vmul.f32 %v768_v26, %v944_v15  ;;  %v168_v34 = vadd.f32 %v623_v30, %v157_v28  ;;  %v662_v28 = vld [vmem:[%s987_s4] ss:$0 sm:$0xff]  ;;  %s867_s4 = smov [#allocation10]  }
 0x16a   :  { %v149_v31 = vmul.f32 %v770_v27, %v939_v9  ;;  %v751_v9 = vld [vmem:[#allocation9 + $0x50] sm:$0xff]   ;;  %s609_s22 = sshll.u32 %s867_s4, 4  ;;  %s610_s22 = int_to_ptr.vmem [resolvable:$true] %s609_s22 }
 0x16b   :  { %v158_v32 = vmul.f32 %v622_v25, %v148_v29  ;;  %688 = vmatprep.subr.bf16.mxu1 %v751_v9  ;;  %s833_s23 = scalar_lea.vmem %s610_s22, 512  ;;  %p838_p2 = scmp.lt.s32.totalorder %s610_s22, %s610_s22 }
 0x16c   :  { %v772_v33 = vpop.eup %771  ;;  %v159_v8 = vmul.f32 %v622_v25, %v149_v31  ;;  %689 = vmatpush3.bf16.msra.mxu1 %v752_v44  ;;  %p834_p1 = scmp.ne.s32.totalorder %s610_s22, %s833_s23  ;;  %p839_p3 = scmp.lt.s32.totalorder %s833_s23, %s833_s23 }
 0x16d   :  { %v169_v36 = vadd.f32 %v623_v30, %v158_v32  ;;  %v150_v37 = vmul.f32 %v772_v33, %v947_v16  ;;  %690 = vmatprep.subr.bf16.mxu1 %v753_v45  ;;  %v755_v16 = vld [vmem:[#allocation9 + $0x40] sm:$0xff]  }
 0x16e   :  { %v170_v40 = vadd.f32 %v623_v30, %v159_v8  ;;  %p840_p4 = por %p839_p3, %p838_p2 }
 0x16f   :  { %v160_v38 = vmul.f32 %v622_v25, %v150_v37  ;;  %v670_v39 = vpack.c.bf16 %v169_v36, %v168_v34 }
 0x170   :  { %691 = vmatpush3.bf16.msra.mxu1 %v754_v46  ;;  %p841_p5 = pnand %p840_p4, %p834_p1 }
 0x171   :  { %v171_v41 = vadd.f32 %v623_v30, %v160_v38  ;;  %671 = vst [vmem:[#allocation2] sm:$0xff] %v670_v39   ;;  %692 = vmatprep.subr.bf16.mxu1 %v755_v16 }
 0x173   :  { %v675_v42 = vpack.c.bf16 %v171_v41, %v170_v40 }
 0x174   :  { %693 = vmatpush3.bf16.msra.mxu1 %v756_v47 }
 0x175   :  { %677 = vst [vmem:[#allocation2 + $0x8] sm:$0xff] %v675_v42  }
 0x178   :  { %v739_v15 = vld [vmem:[#allocation2] sm:$0xff]  }
 0x179   :  { %353 = vmatmul.mubr.bf16.vlgmr.msra.gmra.mxu0 %v739_v15 }
 0x17a   :  { %362 = vmatprep.mubr.bf16.mxu0 %v866_v35  ;;  %v216_v35 = vld [vmem:[%s985_s2] sm:$0x3] }
 0x17b   :  { %v225_v53 = vrot.slane %v216_v35, %v224_v50  ;;  %v221_v54 = vrot.slane %v216_v35, %v220_v51 }
 0x17c   :  { %v740_v43 = vld [vmem:[#allocation2 + $0x8] sm:$0xff]  }
 0x181   :  { %363 = vmatmul.mubr.bf16.gmra.mxu0 %v740_v43 }
 0x239   :  { %v354_v52 = vpop.f32.mrf.mxu0 }
 0x23a   :  { %v355_v59 = vadd.f32 %v354_v52, %v221_v54 }
 0x23b   :  { %v356_v55 = vpop.f32.mrf.mxu0 }
 0x23c   :  { %v357_v57 = vadd.f32 %v356_v55, %v225_v53  ;;  %v373_v6 = vmax.f32 %v355_v59, 0.0 }
 0x23d   :  { %v358_v56 = vpop.f32.mrf.mxu0 }
 0x23e   :  { %v359_v58 = vadd.f32 %v358_v56, %v221_v54  ;;  %v374_v4 = vmax.f32 %v357_v57, 0.0 }
 0x23f   :  { %v360_v60 = vpop.f32.mrf.mxu0 }
 0x240   :  { %v361_v61 = vadd.f32 %v360_v60, %v225_v53  ;;  %v375_v62 = vmax.f32 %v359_v58, 0.0 }
 0x241   :  { %v364_v63 = vpop.f32.mrf.mxu0 }
 0x242   :  { %v376_v5 = vmax.f32 %v361_v61, 0.0  ;;  %v385_v11 = vpack.c.bf16 %v375_v62, %v373_v6  ;;  %v365_v17 = vadd.f32 %v364_v63, %v221_v54 }
 0x243   :  { %v366_v7 = vpop.f32.mrf.mxu0 }
 0x244   :  { %v386_v10 = vpack.c.bf16 %v376_v5, %v374_v4  ;;  %v367_v13 = vadd.f32 %v366_v7, %v225_v53  ;;  %v377_v23 = vmax.f32 %v365_v17, 0.0 }
 0x245   :  { %v368_v12 = vpop.f32.mrf.mxu0 }
 0x246   :  { %v369_v14 = vadd.f32 %v368_v12, %v221_v54  ;;  %549 = vmatprep.mubr.bf16.mxu1 %v386_v10  ;;  %v378_v21 = vmax.f32 %v367_v13, 0.0 }
 0x247   :  { %v370_v18 = vpop.f32.mrf.mxu0  ;;  %550 = vmatmul.mubr.bf16.vlgmr.msra.gmra.mxu1 %v385_v11 }
 0x248   :  { %v371_v19 = vadd.f32 %v370_v18, %v225_v53  ;;  %v379_v20 = vmax.f32 %v369_v14, 0.0 }
 0x24a   :  { %v380_v22 = vmax.f32 %v371_v19, 0.0  ;;  %v387_v25 = vpack.c.bf16 %v379_v20, %v377_v23 }
 0x24c   :  { %v388_v24 = vpack.c.bf16 %v380_v22, %v378_v21 }
 0x24e   :  { %557 = vmatprep.mubr.bf16.mxu1 %v388_v24 }
 0x24f   :  { %558 = vmatmul.mubr.bf16.gmra.mxu1 %v387_v25 }
 0x307   :  { %v694_v26 = vpop.f32.mrf.mxu1 }
 0x309   :  { %v695_v27 = vpop.f32.mrf.mxu1 }
 0x30a   :  { %v696_v29 = vadd.f32 %v695_v27, %v694_v26 }
 0x30b   :  { %v697_v30 = vpop.f32.mrf.mxu1 }
 0x30c   :  { %v588_v31 = vadd.f32 %v696_v29, %v662_v28 }
 0x30d   :  { %v698_v32 = vpop.f32.mrf.mxu1 }
 0x30e   :  { %v596_v33 = vadd.f32 %v588_v31, %v923_v0  ;;  %v699_v34 = vadd.f32 %v698_v32, %v697_v30 }
 0x30f   :  { %v700_v36 = vpop.f32.mrf.mxu1 }
 0x310   :  { %600 = vst [vmem:[#allocation10] sm:$0xff] %v596_v33  ;;  %v589_v8 = vadd.f32 %v699_v34, %v662_v28 }
 0x311   :  { %v701_v37 = vpop.f32.mrf.mxu1 }
 0x312   :  { %v597_v38 = vadd.f32 %v589_v8, %v927_v2  ;;  %v702_v39 = vadd.f32 %v701_v37, %v700_v36 }
 0x313   :  { %v703_v40 = vpop.f32.mrf.mxu1 }
 0x314   :  { %601 = vst [vmem:[#allocation10 + $0x8] sm:$0xff] %v597_v38  ;;  %v590_v41 = vadd.f32 %v702_v39, %v662_v28 }
 0x315   :  { %v704_v42 = vpop.f32.mrf.mxu1 }
 0x316   :  { %v598_v15 = vadd.f32 %v590_v41, %v925_v1  ;;  %v705_v43 = vadd.f32 %v704_v42, %v703_v40 }
 0x318   :  { %602 = vst [vmem:[#allocation10 + $0x10] sm:$0xff] %v598_v15  ;;  %v591_v9 = vadd.f32 %v705_v43, %v662_v28 }
 0x31a   :  { %v599_v0 = vadd.f32 %v591_v9, %v931_v3 }
 0x31c   :  { %603 = vst [vmem:[#allocation10 + $0x18] sm:$0xff] %v599_v0 }
 0x31d   :  { %844 = shalt.err (!%p841_p5)
}
 0x31e   :  { %615 = dma.vmem_to_hbm [thread:$0]  %s610_s22, 512, %s990_s7, [#allocation6], %s861_s29, %s861_s29, %s862_s30  }
 0x31f   :  { %857 = dma.done.wait [#allocation6], 512  }
 0x320   :  { %858 = vsyncadd [#allocation6], 4294966784 }
 0x321   :  { %619 = vsyncpa [#allocation5], 1 }
 0x322   :  { %620 = vsyncpa [#allocation8], 1 }
 0x323   :  { %621 = vsyncpa [#allocation6], 1 }

</bundles_post_ra>
